<compile_context>
chip_gen: v5e
topology: v5e:2x2
jax: 0.10.0
libtpu: 0.0.40
codegen_flags: <defaults>
</compile_context>

<pallas_src>
import functools

import jax
import jax.numpy as jnp
from jax.experimental import pallas as pl
from jax.experimental.pallas import tpu as pltpu

LOG_STD_LOW = -10.0
LOG_STD_HIGH = 2.0


def _round_up(x, m):
    return ((x + m - 1) // m) * m


def _actor_kernel(state_ref, w1_ref, b1_ref, w2_ref, b2_ref,
                  w3mu_ref, b3mu_ref, w3ls_ref, b3ls_ref,
                  mu_ref, std_ref):
    x = state_ref[...]  # bf16 (B_TILE, S)

    # fc1 + relu (f32 accumulate, bf16 feed to next matmul)
    h1 = jnp.dot(x, w1_ref[...], preferred_element_type=jnp.float32) + b1_ref[...]
    h1 = jnp.maximum(h1, 0.0).astype(jnp.bfloat16)

    # fc2 + relu
    h2 = jnp.dot(h1, w2_ref[...], preferred_element_type=jnp.float32) + b2_ref[...]
    h2 = jnp.maximum(h2, 0.0).astype(jnp.bfloat16)

    # fc3, pre-split into mu / log_std halves (no unaligned lane slicing)
    mu = jnp.dot(h2, w3mu_ref[...], preferred_element_type=jnp.float32) + b3mu_ref[...]
    log_std = jnp.dot(h2, w3ls_ref[...], preferred_element_type=jnp.float32) + b3ls_ref[...]

    # squash log_std into [log_std_low, log_std_high], exponentiate (all f32)
    log_std = jnp.tanh(log_std)
    log_std = LOG_STD_LOW + 0.5 * (LOG_STD_HIGH - LOG_STD_LOW) * (log_std + 1.0)
    std = jnp.exp(log_std)

    mu_ref[...] = mu.astype(mu_ref.dtype)
    std_ref[...] = std.astype(std_ref.dtype)


@functools.partial(jax.jit, static_argnames=("block_b",))
def stochastic_actor_forward(state, w1, b1, w2, b2, w3, b3, *, block_b=128):
    """Returns (mu, std) of the SquashedNormal the PyTorch module would build.

    state: (B, S); w1: (S, H); w2: (H, H); w3: (H, 2A); biases: (1, out).
    Weights are already transposed to (in, out) layout.
    """
    B, S = state.shape
    H = w1.shape[1]
    A = w3.shape[1] // 2

    # Pre-split fc3 into mu / log_std halves (free XLA slices in the wrapper).
    w3_mu, w3_ls = w3[:, :A], w3[:, A:]
    b3_mu, b3_ls = b3[:, :A], b3[:, A:]

    # bf16 operands for the MXU; biases stay f32 (added on f32 accumulators).
    state_bf = state.astype(jnp.bfloat16)
    w1_bf = w1.astype(jnp.bfloat16)
    w2_bf = w2.astype(jnp.bfloat16)
    w3_mu_bf = w3_mu.astype(jnp.bfloat16)
    w3_ls_bf = w3_ls.astype(jnp.bfloat16)

    # Batch tiling: multiple of 8 sublanes, capped at block_b; pad B to a
    # whole number of tiles so every block is full.
    b_tile = min(block_b, _round_up(B, 8))
    B_pad = _round_up(B, b_tile)
    if B_pad != B:
        state_bf = jnp.pad(state_bf, ((0, B_pad - B), (0, 0)))
    grid = (B_pad // b_tile,)

    batch_spec = lambda shape: pl.BlockSpec(shape, lambda i: (i, 0))
    const_spec = lambda shape: pl.BlockSpec(shape, lambda i: (0, 0))

    mu, std = pl.pallas_call(
        _actor_kernel,
        out_shape=(
            jax.ShapeDtypeStruct((B_pad, A), jnp.float32),
            jax.ShapeDtypeStruct((B_pad, A), jnp.float32),
        ),
        grid=grid,
        in_specs=[
            batch_spec((b_tile, S)),
            const_spec((S, H)), const_spec((1, H)),
            const_spec((H, H)), const_spec((1, H)),
            const_spec((H, A)), const_spec((1, A)),
            const_spec((H, A)), const_spec((1, A)),
        ],
        out_specs=(
            batch_spec((b_tile, A)),
            batch_spec((b_tile, A)),
        ),
        compiler_params=pltpu.CompilerParams(
            dimension_semantics=("parallel",)),
    )(state_bf, w1_bf, b1, w2_bf, b2, w3_mu_bf, b3_mu, w3_ls_bf, b3_ls)

    return mu[:B], std[:B]


def init_params(key, state_size, act_size, hidden_size):
    """Deterministic parameters mirroring weight_init: orthogonal W, zero bias.

    Returned weights are already transposed to (in, out) for the kernel.
    """
    k1, k2, k3 = jax.random.split(key, 3)
    ortho = jax.nn.initializers.orthogonal()
    # torch Linear weight is (out, in); transpose to (in, out).
    w1 = ortho(k1, (hidden_size, state_size), jnp.float32).T
    w2 = ortho(k2, (hidden_size, hidden_size), jnp.float32).T
    w3 = ortho(k3, (2 * act_size, hidden_size), jnp.float32).T
    b1 = jnp.zeros((1, hidden_size), jnp.float32)
    b2 = jnp.zeros((1, hidden_size), jnp.float32)
    b3 = jnp.zeros((1, 2 * act_size), jnp.float32)
    return w1, b1, w2, b2, w3, b3


def reference_forward(state, w1, b1, w2, b2, w3, b3):
    """Pure-JAX reference mirroring the kernel's bf16 operand / f32 accumulate math."""
    xb = state.astype(jnp.bfloat16)
    h1 = jnp.maximum(
        jnp.dot(xb, w1.astype(jnp.bfloat16), preferred_element_type=jnp.float32) + b1,
        0.0).astype(jnp.bfloat16)
    h2 = jnp.maximum(
        jnp.dot(h1, w2.astype(jnp.bfloat16), preferred_element_type=jnp.float32) + b2,
        0.0).astype(jnp.bfloat16)
    out = jnp.dot(h2, w3.astype(jnp.bfloat16), preferred_element_type=jnp.float32) + b3
    act_size = w3.shape[1] // 2
    mu, log_std = out[:, :act_size], out[:, act_size:]
    log_std = jnp.tanh(log_std)
    log_std = LOG_STD_LOW + 0.5 * (LOG_STD_HIGH - LOG_STD_LOW) * (log_std + 1.0)
    return mu, jnp.exp(log_std)


if __name__ == "__main__":
    key = jax.random.PRNGKey(0)
    k_state, k_params = jax.random.split(key)

    batch = 8
    state_size = 32
    act_size = 8
    hidden_size = 128  # small stand-in for the default 1024

    state = jax.random.normal(k_state, (batch, state_size), jnp.float32)
    params = init_params(k_params, state_size, act_size, hidden_size)

    mu, std = stochastic_actor_forward(state, *params)
    jax.block_until_ready((mu, std))

    mu_ref, std_ref = reference_forward(state, *params)
    assert mu.shape == (batch, act_size) and std.shape == (batch, act_size)
    assert jnp.allclose(mu, mu_ref, atol=1e-2, rtol=1e-2), "mu mismatch"
    assert jnp.allclose(std, std_ref, atol=1e-2, rtol=1e-2), "std mismatch"
    assert bool(jnp.all(std > 0.0))

    print("KERNEL_OK")
</pallas_src>

<mosaic_0001>
module attributes {stable_mosaic.version = 11 : i64} {
  func.func @_actor_kernel(%arg0: i32, %arg1: memref<8x32xbf16, #tpu.memory_space<vmem>>, %arg2: memref<32x128xbf16, #tpu.memory_space<vmem>>, %arg3: memref<1x128xf32, #tpu.memory_space<vmem>>, %arg4: memref<128x128xbf16, #tpu.memory_space<vmem>>, %arg5: memref<1x128xf32, #tpu.memory_space<vmem>>, %arg6: memref<128x8xbf16, #tpu.memory_space<vmem>>, %arg7: memref<1x8xf32, #tpu.memory_space<vmem>>, %arg8: memref<128x8xbf16, #tpu.memory_space<vmem>>, %arg9: memref<1x8xf32, #tpu.memory_space<vmem>>, %arg10: memref<8x8xf32, #tpu.memory_space<vmem>>, %arg11: memref<8x8xf32, #tpu.memory_space<vmem>>) attributes {dimension_semantics = [#tpu.dimension_semantics<parallel>], iteration_bounds = array<i64: 1>, scalar_prefetch = 0 : i64, scratch_operands = 0 : i64, tpu.core_type = #tpu.core_type<tc>, window_params = [{transform_indices = @transform_0, window_bounds = array<i64: 8, 32>}, {pipeline_mode = #tpu.pipeline_mode<synchronous>, transform_indices = @transform_1, window_bounds = array<i64: 32, 128>}, {pipeline_mode = #tpu.pipeline_mode<synchronous>, transform_indices = @transform_2, window_bounds = array<i64: 1, 128>}, {pipeline_mode = #tpu.pipeline_mode<synchronous>, transform_indices = @transform_3, window_bounds = array<i64: 128, 128>}, {pipeline_mode = #tpu.pipeline_mode<synchronous>, transform_indices = @transform_4, window_bounds = array<i64: 1, 128>}, {pipeline_mode = #tpu.pipeline_mode<synchronous>, transform_indices = @transform_5, window_bounds = array<i64: 128, 8>}, {pipeline_mode = #tpu.pipeline_mode<synchronous>, transform_indices = @transform_6, window_bounds = array<i64: 1, 8>}, {pipeline_mode = #tpu.pipeline_mode<synchronous>, transform_indices = @transform_7, window_bounds = array<i64: 128, 8>}, {pipeline_mode = #tpu.pipeline_mode<synchronous>, transform_indices = @transform_8, window_bounds = array<i64: 1, 8>}, {transform_indices = @transform_9, window_bounds = array<i64: 8, 8>}, {transform_indices = @transform_10, window_bounds = array<i64: 8, 8>}]} {
    %c0 = arith.constant 0 : index
    %c0_0 = arith.constant 0 : index
    %0 = vector.load %arg1[%c0, %c0_0] : memref<8x32xbf16, #tpu.memory_space<vmem>>, vector<8x32xbf16>
    %c0_1 = arith.constant 0 : index
    %c0_2 = arith.constant 0 : index
    %1 = vector.load %arg2[%c0_1, %c0_2] : memref<32x128xbf16, #tpu.memory_space<vmem>>, vector<32x128xbf16>
    %cst = arith.constant dense<0.000000e+00> : vector<8x128xf32>
    %2 = tpu.matmul %0, %1, %cst {dimension_numbers = #tpu.dot_dimension_numbers<[1], [0], [0], [1], [0, 0, 1, 1], [], []>} : vector<8x32xbf16>, vector<32x128xbf16>, vector<8x128xf32> -> vector<8x128xf32>
    %c0_3 = arith.constant 0 : index
    %c0_4 = arith.constant 0 : index
    %3 = vector.load %arg3[%c0_3, %c0_4] : memref<1x128xf32, #tpu.memory_space<vmem>>, vector<1x128xf32>
    %4 = vector.broadcast %3 : vector<1x128xf32> to vector<8x128xf32>
    %5 = arith.addf %2, %4 : vector<8x128xf32>
    %cst_5 = arith.constant 0.000000e+00 : f32
    %6 = vector.broadcast %cst_5 : f32 to vector<8x128xf32>
    %7 = arith.maximumf %5, %6 : vector<8x128xf32>
    %8 = arith.truncf %7 : vector<8x128xf32> to vector<8x128xbf16>
    %c0_6 = arith.constant 0 : index
    %c0_7 = arith.constant 0 : index
    %9 = vector.load %arg4[%c0_6, %c0_7] : memref<128x128xbf16, #tpu.memory_space<vmem>>, vector<128x128xbf16>
    %cst_8 = arith.constant dense<0.000000e+00> : vector<8x128xf32>
    %10 = tpu.matmul %8, %9, %cst_8 {dimension_numbers = #tpu.dot_dimension_numbers<[1], [0], [0], [1], [0, 0, 1, 1], [], []>} : vector<8x128xbf16>, vector<128x128xbf16>, vector<8x128xf32> -> vector<8x128xf32>
    %c0_9 = arith.constant 0 : index
    %c0_10 = arith.constant 0 : index
    %11 = vector.load %arg5[%c0_9, %c0_10] : memref<1x128xf32, #tpu.memory_space<vmem>>, vector<1x128xf32>
    %12 = vector.broadcast %11 : vector<1x128xf32> to vector<8x128xf32>
    %13 = arith.addf %10, %12 : vector<8x128xf32>
    %cst_11 = arith.constant 0.000000e+00 : f32
    %14 = vector.broadcast %cst_11 : f32 to vector<8x128xf32>
    %15 = arith.maximumf %13, %14 : vector<8x128xf32>
    %16 = arith.truncf %15 : vector<8x128xf32> to vector<8x128xbf16>
    %c0_12 = arith.constant 0 : index
    %c0_13 = arith.constant 0 : index
    %17 = vector.load %arg6[%c0_12, %c0_13] : memref<128x8xbf16, #tpu.memory_space<vmem>>, vector<128x8xbf16>
    %cst_14 = arith.constant dense<0.000000e+00> : vector<8x8xf32>
    %18 = tpu.matmul %16, %17, %cst_14 {dimension_numbers = #tpu.dot_dimension_numbers<[1], [0], [0], [1], [0, 0, 1, 1], [], []>} : vector<8x128xbf16>, vector<128x8xbf16>, vector<8x8xf32> -> vector<8x8xf32>
    %c0_15 = arith.constant 0 : index
    %c0_16 = arith.constant 0 : index
    %19 = vector.load %arg7[%c0_15, %c0_16] : memref<1x8xf32, #tpu.memory_space<vmem>>, vector<1x8xf32>
    %20 = vector.broadcast %19 : vector<1x8xf32> to vector<8x8xf32>
    %21 = arith.addf %18, %20 : vector<8x8xf32>
    %c0_17 = arith.constant 0 : index
    %c0_18 = arith.constant 0 : index
    %22 = vector.load %arg8[%c0_17, %c0_18] : memref<128x8xbf16, #tpu.memory_space<vmem>>, vector<128x8xbf16>
    %cst_19 = arith.constant dense<0.000000e+00> : vector<8x8xf32>
    %23 = tpu.matmul %16, %22, %cst_19 {dimension_numbers = #tpu.dot_dimension_numbers<[1], [0], [0], [1], [0, 0, 1, 1], [], []>} : vector<8x128xbf16>, vector<128x8xbf16>, vector<8x8xf32> -> vector<8x8xf32>
    %c0_20 = arith.constant 0 : index
    %c0_21 = arith.constant 0 : index
    %24 = vector.load %arg9[%c0_20, %c0_21] : memref<1x8xf32, #tpu.memory_space<vmem>>, vector<1x8xf32>
    %25 = vector.broadcast %24 : vector<1x8xf32> to vector<8x8xf32>
    %26 = arith.addf %23, %25 : vector<8x8xf32>
    %27 = math.tanh %26 : vector<8x8xf32>
    %cst_22 = arith.constant 1.000000e+00 : f32
    %28 = vector.broadcast %cst_22 : f32 to vector<8x8xf32>
    %29 = arith.addf %27, %28 : vector<8x8xf32>
    %cst_23 = arith.constant 6.000000e+00 : f32
    %30 = vector.broadcast %cst_23 : f32 to vector<8x8xf32>
    %31 = arith.mulf %30, %29 : vector<8x8xf32>
    %cst_24 = arith.constant -1.000000e+01 : f32
    %32 = vector.broadcast %cst_24 : f32 to vector<8x8xf32>
    %33 = arith.addf %32, %31 : vector<8x8xf32>
    %34 = math.exp %33 : vector<8x8xf32>
    %c0_25 = arith.constant 0 : index
    %c0_26 = arith.constant 0 : index
    %35 = vector.load %arg10[%c0_25, %c0_26] : memref<8x8xf32, #tpu.memory_space<vmem>>, vector<8x8xf32>
    tpu.vector_store %arg10[%c0_25, %c0_26], %21 {strides = array<i32>} : memref<8x8xf32, #tpu.memory_space<vmem>>, vector<8x8xf32>,
    %c0_27 = arith.constant 0 : index
    %c0_28 = arith.constant 0 : index
    %36 = vector.load %arg11[%c0_27, %c0_28] : memref<8x8xf32, #tpu.memory_space<vmem>>, vector<8x8xf32>
    tpu.vector_store %arg11[%c0_27, %c0_28], %34 {strides = array<i32>} : memref<8x8xf32, #tpu.memory_space<vmem>>, vector<8x8xf32>,
    return
  }
  func.func @transform_0(%arg0: i32) -> (i32, i32) {
    %c0_i32 = arith.constant 0 : i32
    %c0_i32_0 = arith.constant 0 : i32
    return %arg0, %c0_i32 : i32, i32
  }
  func.func @transform_1(%arg0: i32) -> (i32, i32) {
    %c0_i32 = arith.constant 0 : i32
    %c0_i32_0 = arith.constant 0 : i32
    %c0_i32_1 = arith.constant 0 : i32
    return %c0_i32, %c0_i32_0 : i32, i32
  }
  func.func @transform_2(%arg0: i32) -> (i32, i32) {
    %c0_i32 = arith.constant 0 : i32
    %c0_i32_0 = arith.constant 0 : i32
    %c0_i32_1 = arith.constant 0 : i32
    return %c0_i32, %c0_i32_0 : i32, i32
  }
  func.func @transform_3(%arg0: i32) -> (i32, i32) {
    %c0_i32 = arith.constant 0 : i32
    %c0_i32_0 = arith.constant 0 : i32
    %c0_i32_1 = arith.constant 0 : i32
    return %c0_i32, %c0_i32_0 : i32, i32
  }
  func.func @transform_4(%arg0: i32) -> (i32, i32) {
    %c0_i32 = arith.constant 0 : i32
    %c0_i32_0 = arith.constant 0 : i32
    %c0_i32_1 = arith.constant 0 : i32
    return %c0_i32, %c0_i32_0 : i32, i32
  }
  func.func @transform_5(%arg0: i32) -> (i32, i32) {
    %c0_i32 = arith.constant 0 : i32
    %c0_i32_0 = arith.constant 0 : i32
    %c0_i32_1 = arith.constant 0 : i32
    return %c0_i32, %c0_i32_0 : i32, i32
  }
  func.func @transform_6(%arg0: i32) -> (i32, i32) {
    %c0_i32 = arith.constant 0 : i32
    %c0_i32_0 = arith.constant 0 : i32
    %c0_i32_1 = arith.constant 0 : i32
    return %c0_i32, %c0_i32_0 : i32, i32
  }
  func.func @transform_7(%arg0: i32) -> (i32, i32) {
    %c0_i32 = arith.constant 0 : i32
    %c0_i32_0 = arith.constant 0 : i32
    %c0_i32_1 = arith.constant 0 : i32
    return %c0_i32, %c0_i32_0 : i32, i32
  }
  func.func @transform_8(%arg0: i32) -> (i32, i32) {
    %c0_i32 = arith.constant 0 : i32
    %c0_i32_0 = arith.constant 0 : i32
    %c0_i32_1 = arith.constant 0 : i32
    return %c0_i32, %c0_i32_0 : i32, i32
  }
  func.func @transform_9(%arg0: i32) -> (i32, i32) {
    %c0_i32 = arith.constant 0 : i32
    %c0_i32_0 = arith.constant 0 : i32
    return %arg0, %c0_i32 : i32, i32
  }
  func.func @transform_10(%arg0: i32) -> (i32, i32) {
    %c0_i32 = arith.constant 0 : i32
    %c0_i32_0 = arith.constant 0 : i32
    return %arg0, %c0_i32 : i32, i32
  }
}

</mosaic_0001>

<bundles_post_ra>
// kernel: stochastic_actor_forward.1
= control target key start
LH: loop header
LB: loop body
LE: loop exit
PB: predicated region body
PF: predicated region fallthrough
CT: control target
= control target key end

     0   :  { %16 = vsyncpa [#allocation3], 0  ;;  %s714_s0 = inlined_call_operand.vmem [shape: bf16[8,32], index: 0, kind: input, shape index: {}]   ;;  %s715_s1 = inlined_call_operand.vmem [shape: bf16[32,128], index: 1, kind: input, shape index: {}]   ;;  %s716_s2 = inlined_call_operand.vmem [shape: f32[1,128], index: 2, kind: input, shape index: {}]   ;;  %s717_s3 = inlined_call_operand.vmem [shape: bf16[128,128], index: 3, kind: input, shape index: {}]   ;;  %s718_s4 = inlined_call_operand.vmem [shape: f32[1,128], index: 4, kind: input, shape index: {}]   ;;  %s719_s5 = inlined_call_operand.vmem [shape: bf16[128,8], index: 5, kind: input, shape index: {}]   ;;  %s720_s6 = inlined_call_operand.vmem [shape: f32[1,8], index: 6, kind: input, shape index: {}]   ;;  %s721_s7 = inlined_call_operand.vmem [shape: bf16[128,8], index: 7, kind: input, shape index: {}]   ;;  %s722_s8 = inlined_call_operand.vmem [shape: f32[1,8], index: 8, kind: input, shape index: {}]   ;;  %s723_s9 = inlined_call_operand.hbm [shape: f32[8,8], index: 9, kind: output, shape index: {0}]   ;;  %s724_s10 = inlined_call_operand.hbm [shape: f32[8,8], index: 10, kind: output, shape index: {1}]  }
   0x1   :  { %v469_v0 = vld [vmem:[%s715_s1 + $0x8] sm:$0xff]  ;;  %v477_v1 = vld [vmem:[%s717_s3 + $0x38] sm:$0xff]  ;;  %v468_v2 = vld [vmem:[%s715_s1] sm:$0xff] }
   0x2   :  { %68 = vmatpush.bf16.msra.mxu0 %v469_v0  ;;  %145 = vmatpush.bf16.msra.mxu1 %v477_v1  ;;  %v476_v3 = vld [vmem:[%s717_s3 + $0x30] sm:$0xff] }
   0x3   :  { %17 = vsyncpa [#allocation5], 0  ;;  %v37_v4 = vld [vmem:[%s714_s0] sm:$0xf]  ;;  %vm58_vm0 = vcmask 261120   ;;  %v475_v5 = vld [vmem:[%s717_s3 + $0x28] sm:$0xff] }
   0x4   :  { %v474_v6 = vld [vmem:[%s717_s3 + $0x20] sm:$0xff]  ;;  %v473_v7 = vld [vmem:[%s717_s3 + $0x18] sm:$0xff]  ;;  %v472_v8 = vld [vmem:[%s717_s3 + $0x10] sm:$0xff]  ;;  %vm328_vm1 = vcmask 64512   ;;  %s349_s29 = sshll.u32 %s724_s10, 4  ;;  %s350_s29 = int_to_ptr.hbm [resolvable:$true] %s349_s29 }
   0x5   :  { %v471_v9 = vld [vmem:[%s717_s3 + $0x8] sm:$0xff]  ;;  %v470_v10 = vld [vmem:[%s717_s3] sm:$0xff]  ;;  %v485_v11 = vld [vmem:[%s719_s5 + $0x38] sm:$0xff] }
   0x6   :  { %69 = vmatpush.bf16.msra.mxu0 %v468_v2  ;;  %146 = vmatpush.bf16.msra.mxu1 %v476_v3  ;;  %v493_v12 = vld [vmem:[%s721_s7 + $0x38] sm:$0xff]  ;;  %v484_v13 = vld [vmem:[%s719_s5 + $0x30] sm:$0xff]  ;;  %v483_v15 = vld [vmem:[%s719_s5 + $0x28] sm:$0xff] }
   0x7   :  { %228 = vmatpush.bf16.msra.mxu2 %v485_v11  ;;  %309 = vmatpush.bf16.msra.mxu3 %v493_v12  ;;  %v492_v14 = vld [vmem:[%s721_s7 + $0x30] sm:$0xff]  ;;  %v491_v16 = vld [vmem:[%s721_s7 + $0x28] sm:$0xff]  ;;  %v482_v17 = vld [vmem:[%s719_s5 + $0x20] sm:$0xff] }
   0x8   :  { %v490_v18 = vld [vmem:[%s721_s7 + $0x20] sm:$0xff]  ;;  %v481_v19 = vld [vmem:[%s719_s5 + $0x18] sm:$0xff]  ;;  %v480_v21 = vld [vmem:[%s719_s5 + $0x10] sm:$0xff] }
   0x9   :  { %371 = vmatmul.msk.bf16.vlgmr.msra.gmra.mxu0 %vm58_vm0, %v37_v4  ;;  %v489_v20 = vld [vmem:[%s721_s7 + $0x18] sm:$0xff]  ;;  %v488_v22 = vld [vmem:[%s721_s7 + $0x10] sm:$0xff]  ;;  %v496_v23 = vld [vmem:[%s716_s2] ss:$0 sm:$0xff] }
   0xa   :  { %147 = vmatpush.bf16.msra.mxu1 %v475_v5  ;;  %v479_v29 = vld [vmem:[%s719_s5 + $0x8] sm:$0xff]  ;;  %v478_v31 = vld [vmem:[%s719_s5] sm:$0xff] }
   0xb   :  { %229 = vmatpush.bf16.msra.mxu2 %v484_v13  ;;  %310 = vmatpush.bf16.msra.mxu3 %v492_v14  ;;  %v487_v30 = vld [vmem:[%s721_s7 + $0x8] sm:$0xff]  ;;  %v486_v32 = vld [vmem:[%s721_s7] sm:$0xff]  ;;  %s556_s7 = smov [#allocation2]  }
   0xc   :  { %v497_v33 = vld [vmem:[%s718_s4] ss:$0 sm:$0xff]  ;;  %s336_s26 = sshll.u32 %s556_s7, 4  ;;  %s338_s4 = sshll.u32 %s723_s9, 4  ;;  %s337_s26 = int_to_ptr.vmem [resolvable:$true] %s336_s26  ;;  %s339_s4 = int_to_ptr.hbm [resolvable:$true] %s338_s4 }
   0xd   :  { %v498_v39 = vld [vmem:[%s720_s6] ss:$0 sm:$0xff]  ;;  %s557_s6 = smov [#allocation4]  }
   0xe   :  { %148 = vmatpush.bf16.msra.mxu1 %v474_v6  ;;  %v499_v40 = vld [vmem:[%s722_s8] ss:$0 sm:$0xff]  ;;  %s347_s8 = sshll.u32 %s557_s6, 4  ;;  %s348_s8 = int_to_ptr.vmem [resolvable:$true] %s347_s8 }
   0xf   :  { %230 = vmatpush.bf16.msra.mxu2 %v483_v15  ;;  %311 = vmatpush.bf16.msra.mxu3 %v491_v16 }
  0x12   :  { %149 = vmatpush.bf16.msra.mxu1 %v473_v7 }
  0x13   :  { %231 = vmatpush.bf16.msra.mxu2 %v482_v17  ;;  %312 = vmatpush.bf16.msra.mxu3 %v490_v18 }
  0x16   :  { %150 = vmatpush.bf16.msra.mxu1 %v472_v8 }
  0x17   :  { %232 = vmatpush.bf16.msra.mxu2 %v481_v19  ;;  %313 = vmatpush.bf16.msra.mxu3 %v489_v20 }
  0x1a   :  { %151 = vmatpush.bf16.msra.mxu1 %v471_v9 }
  0x1b   :  { %233 = vmatpush.bf16.msra.mxu2 %v480_v21  ;;  %314 = vmatpush.bf16.msra.mxu3 %v488_v22 }
  0x1e   :  { %152 = vmatpush.bf16.msra.mxu1 %v470_v10 }
  0x1f   :  { %234 = vmatpush.bf16.msra.mxu2 %v479_v29  ;;  %315 = vmatpush.bf16.msra.mxu3 %v487_v30 }
  0x23   :  { %235 = vmatpush.bf16.msra.mxu2 %v478_v31  ;;  %316 = vmatpush.bf16.msra.mxu3 %v486_v32 }
  0x86   :  { %v71_v24 = vpop.f32.mrf.mxu0 }
  0x87   :  { %v72_v25 = vadd.f32 %v496_v23, %v71_v24 }
  0x89   :  { %v75_v26 = vmax.f32 %v72_v25, 0.0 }
  0x8b   :  { %v76_v27 = vpack.c.bf16 %v75_v26, %v75_v26 }
  0x8d   :  { %153 = vmatmul.bf16.vlgmr.msra.gmra.mxu1 %v76_v27 }
  0x8e   :  { %v73_v28 = vpop.f32.mrf.mxu0 }
 0x10a   :  { %v154_v34 = vpop.f32.mrf.mxu1 }
 0x10b   :  { %v155_v35 = vadd.f32 %v497_v33, %v154_v34 }
 0x10d   :  { %v158_v36 = vmax.f32 %v155_v35, 0.0 }
 0x10f   :  { %v159_v37 = vpack.c.bf16 %v158_v36, %v158_v36 }
 0x111   :  { %236 = vmatmul.bf16.vlgmr.msra.gmra.mxu2 %v159_v37  ;;  %317 = vmatmul.bf16.vlgmr.msra.gmra.mxu3 %v159_v37 }
 0x112   :  { %v156_v38 = vpop.f32.mrf.mxu1 }
 0x194   :  { %v237_v41 = vpop.f32.mrf.mxu2  ;;  %v318_v42 = vpop.f32.mrf.mxu3 }
 0x195   :  { %v238_v43 = vadd.f32 %v498_v39, %v237_v41  ;;  %v319_v44 = vadd.f32 %v499_v40, %v318_v42 }
 0x197   :  { %500 = vtanh.f32 %v319_v44  ;;  %329 = vst.msk [vmem:[#allocation2] sm:$0xff] %vm328_vm1, %v238_v43 }
 0x198   :  { %341 = dma.vmem_to_hbm [thread:$0]  %s337_s26, 128, %s339_s4, [#allocation3]  }
 0x19c   :  { %v239_v45 = vpop.f32.mrf.mxu2  ;;  %v320_v46 = vpop.f32.mrf.mxu3 }
 0x19d   :  { %v501_v47 = vpop.eup %500 }
 0x19e   :  { %v323_v48 = vadd.f32 1.0, %v501_v47 }
 0x1a0   :  { %v324_v49 = vmul.f32 6.0, %v323_v48 }
 0x1a2   :  { %v325_v50 = vadd.f32 -10.0, %v324_v49 }
 0x1a4   :  { %v326_v51 = vmul.f32 1.442695, %v325_v50 }
 0x1a6   :  { %502 = vpow2.f32 %v326_v51 }
 0x1ac   :  { %v503_v52 = vpop.eup %502 }
 0x1ad   :  { %330 = vst.msk [vmem:[#allocation4] sm:$0xff] %vm328_vm1, %v503_v52 }
 0x1ae   :  { %352 = dma.vmem_to_hbm [thread:$0]  %s348_s8, 128, %s350_s29, [#allocation5]  }
 0x1af   :  { %552 = dma.done.wait [#allocation3], 128  }
 0x1b0   :  { %553 = vsyncadd [#allocation3], 4294967168 }
 0x1b1   :  { %554 = dma.done.wait [#allocation5], 128  }
 0x1b2   :  { %555 = vsyncadd [#allocation5], 4294967168 }
 0x1b3   :  { %361 = vsyncpa [#allocation3], 1 }
 0x1b4   :  { %362 = vsyncpa [#allocation5], 1 }

</bundles_post_ra>
